<compile_context>
chip_gen: v7x
topology: tpu7x:2x2x1
jax: 0.10.0
libtpu: 0.0.40
codegen_flags: <defaults>
</compile_context>

<pallas_src>
import functools

import jax
import jax.numpy as jnp
from jax.experimental import pallas as pl
from jax.experimental.pallas import tpu as pltpu


def _vmem_limit_bytes():
    """Generation-aware scoped-VMEM budget (~3/4 of physical: ~96 MiB on v5e/v6e,
    ~48 MiB on v7x), with a conservative v7x-safe fallback."""
    try:
        cap = int(pltpu.get_tpu_info().vmem_capacity_bytes)
    except Exception:
        cap = 64 * 1024 * 1024
    return min((cap * 3) // 4, 100 * 1024 * 1024)


_VMEM_LIMIT = _vmem_limit_bytes()


def _spatial_tile(hw):
    """Largest lane-dense spatial tile (multiple of 128, preferring >=256 for the
    256-wide v6e/v7x MXU N-dim) that divides HW; otherwise the full extent."""
    for t in (2048, 1024, 512, 256, 128):
        if hw % t == 0:
            return t
    return hw  # full extent is always a legal block


# ----------------------------------------------------------------------------
# Kernel 1: "collect" branch with fused 1x1 convs (kc | vs) and online softmax.
#   per head:  attn = softmax_f(q . kc[:, f] / Tc) @ vs^T        -> (d_k,) vector
# Grid (B, spatial tiles); the spatial axis is a reduction ("arbitrary") carrying
# online-softmax accumulators in VMEM scratch.  Weights stay resident; the conv
# runs on the MXU (bf16 operands, f32 accumulation); head reductions are VPU/XLU.
# ----------------------------------------------------------------------------
def _collect_kernel(scal_ref, q_ref, v_ref, w_ref, b_ref, attn_ref,
                    m_sc, l_sc, acc_sc, *, n_head, d_k):
    t = pl.program_id(1)
    d_o = n_head * d_k

    @pl.when(t == 0)
    def _init():
        m_sc[...] = jnp.full_like(m_sc, -jnp.inf)
        l_sc[...] = jnp.zeros_like(l_sc)
        acc_sc[...] = jnp.zeros_like(acc_sc)

    inv_tc = scal_ref[0]

    # Fused 1x1 conv (kc | vs) on the MXU for this spatial tile.
    kv = jnp.dot(w_ref[...], v_ref[...],
                 preferred_element_type=jnp.float32) + b_ref[...]      # (2*d_o, tile)
    tile = kv.shape[1]
    kc = kv[:d_o, :].reshape(n_head, d_k, tile)
    vs = kv[d_o:, :].reshape(n_head, d_k, tile)
    qh = q_ref[...].reshape(n_head, d_k, 1)

    # collect logits: per-head q . kc (sublane reduction), scaled by 1/Tc.
    logits = jnp.sum(kc * qh, axis=1, keepdims=True) * inv_tc          # (n_head, 1, tile)

    # online softmax across spatial tiles
    m_new = jnp.maximum(m_sc[...], jnp.max(logits, axis=2, keepdims=True))
    alpha = jnp.exp(m_sc[...] - m_new)
    p = jnp.exp(logits - m_new)                                        # (n_head, 1, tile)
    l_sc[...] = alpha * l_sc[...] + jnp.sum(p, axis=2, keepdims=True)
    acc_sc[...] = alpha * acc_sc[...] + jnp.sum(vs * p, axis=2, keepdims=True)
    m_sc[...] = m_new

    @pl.when(t == pl.num_programs(1) - 1)
    def _finalize():
        # Exact divide on a tiny (n_head, d_k, 1) shape (no approx-reciprocal drift).
        attn_ref[...] = (acc_sc[...] / l_sc[...]).reshape(d_o, 1)


def _collect(inv_temps, q_cols, v_sw, w_cv, b_cv, *, n_head, d_k, tile):
    B, d_o, _ = q_cols.shape
    _, d_v, hw = v_sw.shape
    n_t = hw // tile
    kernel = functools.partial(_collect_kernel, n_head=n_head, d_k=d_k)
    return pl.pallas_call(
        kernel,
        out_shape=jax.ShapeDtypeStruct((B, d_o, 1), jnp.float32),
        grid=(B, n_t),
        in_specs=[
            pl.BlockSpec(memory_space=pltpu.MemorySpace.SMEM),           # [1/Tc, 1/Td]
            pl.BlockSpec((None, d_o, 1), lambda b, t: (b, 0, 0)),        # q column
            pl.BlockSpec((None, d_v, tile), lambda b, t: (b, 0, t)),     # v tile (bf16)
            pl.BlockSpec((2 * d_o, d_v), lambda b, t: (0, 0)),           # resident W_kc|W_vs
            pl.BlockSpec((2 * d_o, 1), lambda b, t: (0, 0)),             # resident bias
        ],
        out_specs=pl.BlockSpec((None, d_o, 1), lambda b, t: (b, 0, 0)),
        scratch_shapes=[
            pltpu.VMEM((n_head, 1, 1), jnp.float32),     # running max m
            pltpu.VMEM((n_head, 1, 1), jnp.float32),     # running denom l
            pltpu.VMEM((n_head, d_k, 1), jnp.float32),   # running weighted sum
        ],
        compiler_params=pltpu.CompilerParams(
            dimension_semantics=("parallel", "arbitrary"),
            vmem_limit_bytes=_VMEM_LIMIT,
        ),
    )(inv_temps, q_cols, v_sw, w_cv, b_cv)


# ----------------------------------------------------------------------------
# Kernel 2: "diffuse" branch with fused 1x1 conv (kd) + residual + BatchNorm2d(eval)
# + LeakyReLU(0.1).  Grid (B, spatial tiles), fully parallel.  kd is recomputed on
# the MXU from the same streamed v tile (cheaper than a kkv HBM round trip); the
# residual streams in its original f32 NCHW order; output blocks are lane dense.
# ----------------------------------------------------------------------------
def _diffuse_kernel(scal_ref, q_ref, attn_ref, v_ref, res_ref, w_ref, b_ref,
                    scale_ref, shift_ref, o_ref, *, n_head, d_k):
    d_o = n_head * d_k
    inv_td = scal_ref[1]

    # Fused 1x1 conv (kd) on the MXU for this spatial tile.
    kd = jnp.dot(w_ref[...], v_ref[...],
                 preferred_element_type=jnp.float32) + b_ref[...]      # (d_o, tile)
    tile = kd.shape[1]

    qh = q_ref[...].reshape(n_head, d_k, 1)
    gate = jax.nn.sigmoid(
        jnp.sum(kd.reshape(n_head, d_k, tile) * qh, axis=1, keepdims=True) * inv_td)
    attn = attn_ref[...].reshape(n_head, d_k, 1)

    # diffuse outer product + residual + BN(eval) + LeakyReLU(0.1), all in f32.
    y = (gate * attn).reshape(d_o, tile) + res_ref[...]
    y = y * scale_ref[...] + shift_ref[...]
    o_ref[...] = jnp.where(y >= 0.0, y, 0.1 * y)


def _diffuse(inv_temps, q_cols, attn_vec, v_sw, res, w_kd, b_kd, scale_col,
             shift_col, *, n_head, d_k, tile):
    B, d_o, _ = q_cols.shape
    _, d_v, hw = v_sw.shape
    n_t = hw // tile
    kernel = functools.partial(_diffuse_kernel, n_head=n_head, d_k=d_k)
    return pl.pallas_call(
        kernel,
        out_shape=jax.ShapeDtypeStruct((B, d_o, hw), jnp.float32),
        grid=(B, n_t),
        in_specs=[
            pl.BlockSpec(memory_space=pltpu.MemorySpace.SMEM),           # [1/Tc, 1/Td]
            pl.BlockSpec((None, d_o, 1), lambda b, t: (b, 0, 0)),        # q column
            pl.BlockSpec((None, d_o, 1), lambda b, t: (b, 0, 0)),        # collected attn
            pl.BlockSpec((None, d_v, tile), lambda b, t: (b, 0, t)),     # v tile (bf16, swapped order)
            pl.BlockSpec((None, d_v, tile), lambda b, t: (b, 0, t)),     # residual tile (f32, NCHW order)
            pl.BlockSpec((d_o, d_v), lambda b, t: (0, 0)),               # resident W_kd
            pl.BlockSpec((d_o, 1), lambda b, t: (0, 0)),                 # resident bias
            pl.BlockSpec((d_o, 1), lambda b, t: (0, 0)),                 # BN scale
            pl.BlockSpec((d_o, 1), lambda b, t: (0, 0)),                 # BN shift
        ],
        out_specs=pl.BlockSpec((None, d_o, tile), lambda b, t: (b, 0, t)),
        compiler_params=pltpu.CompilerParams(
            dimension_semantics=("parallel", "parallel"),
            vmem_limit_bytes=_VMEM_LIMIT,
        ),
    )(inv_temps, q_cols, attn_vec, v_sw, res, w_kd, b_kd, scale_col, shift_col)


# ----------------------------------------------------------------------------
# Full GaranAttention forward (eval mode)
# ----------------------------------------------------------------------------
def garan_attention_forward(q, v, params, n_head):
    B, _ = q.shape
    Bv, d_v, H, W = v.shape
    assert B == Bv
    d_o = params["w_kc_w"].shape[0]               # conv weight is (d_o, d_v, 1, 1)
    assert d_o == d_v, "residual add requires d_o == d_v (module sets d_o = d_v)"
    assert d_o % n_head == 0
    d_k = d_o // n_head
    # Keep per-head reshapes (8,128)-tile aligned.
    # TODO(synk): pad d_k up to a multiple of 8 instead of asserting.
    assert d_k % 8 == 0, "d_k must be a multiple of 8 (sublane alignment)"
    HW = H * W
    tile = _spatial_tile(HW)

    # ---- q Linear: tiny, left to XLA (a Pallas launch would be pure overhead) ----
    q_cols = (q @ params["w_qs_w"].T + params["w_qs_b"]).reshape(B, d_o, 1)

    # ---- conv operand: bf16 cast BEFORE the spatial swap (halves transpose bytes).
    # The swapped (H, W) flat order equals the final output's flat spatial order
    # (PyTorch's permute(0,1,4,3,2).view chain), so the diffuse kernel writes straight
    # into NCHW layout with no in-kernel or post-kernel transposes.
    v_sw = jnp.swapaxes(v.astype(jnp.bfloat16), 2, 3).reshape(B, d_v, HW)
    # Residual streams in its original f32 NCHW order (read directly, no extra copy).
    res = v.reshape(B, d_v, HW)

    # ---- resident conv weights (bf16 MXU operands, f32 biases) ----
    w_kc = params["w_kc_w"].reshape(d_o, d_v)
    w_kd = params["w_kd_w"].reshape(d_o, d_v)
    w_vs = params["w_vs_w"].reshape(d_o, d_v)
    w_cv = jnp.concatenate([w_kc, w_vs], axis=0).astype(jnp.bfloat16)      # (2*d_o, d_v)
    b_cv = jnp.concatenate([params["w_kc_b"], params["w_vs_b"]]
                           ).reshape(2 * d_o, 1).astype(jnp.float32)
    w_kd = w_kd.astype(jnp.bfloat16)
    b_kd = params["w_kd_b"].reshape(d_o, 1).astype(jnp.float32)

    # ---- BatchNorm2d(eval) folded into per-channel scale/shift ----
    eps = 1e-5
    scale = (params["bn_gamma"] * jax.lax.rsqrt(params["bn_var"] + eps)).reshape(d_o, 1)
    shift = params["bn_beta"].reshape(d_o, 1) - params["bn_mean"].reshape(d_o, 1) * scale

    inv_temps = jnp.stack([1.0 / params["temperature_c"],
                           1.0 / params["temperature_d"]]).astype(jnp.float32)

    attn_vec = _collect(inv_temps, q_cols, v_sw, w_cv, b_cv,
                        n_head=n_head, d_k=d_k, tile=tile)                 # (B, d_o, 1)
    out = _diffuse(inv_temps, q_cols, attn_vec, v_sw, res, w_kd, b_kd,
                   scale, shift, n_head=n_head, d_k=d_k, tile=tile)        # (B, d_o, HW)
    return out.reshape(B, d_o, H, W)


# ----------------------------------------------------------------------------
# Pure-JAX reference (mirrors the PyTorch module, eval mode)
# ----------------------------------------------------------------------------
def reference_forward(q, v, params, n_head):
    B, d_q = q.shape
    _, d_v, H, W = v.shape
    d_o = params["w_kc_w"].shape[0]
    d_k = d_o // n_head
    HW = H * W

    q_proj = q @ params["w_qs_w"].T + params["w_qs_b"]

    def conv1x1(x, w, b):
        wf = w.reshape(d_o, d_v)
        return jnp.einsum("bchw,oc->bohw", x, wf) + b[None, :, None, None]

    kc = conv1x1(v, params["w_kc_w"], params["w_kc_b"]).reshape(B, n_head, d_k, HW)
    kd = conv1x1(v, params["w_kd_w"], params["w_kd_b"]).reshape(B, n_head, d_k, HW)
    vv = conv1x1(v, params["w_vs_w"], params["w_vs_b"]).reshape(B, n_head, d_k, HW)

    qh = q_proj.reshape(B * n_head, 1, d_k)
    kc = jnp.transpose(kc, (0, 1, 3, 2)).reshape(B * n_head, HW, d_k)
    kd = jnp.transpose(kd, (0, 1, 3, 2)).reshape(B * n_head, HW, d_k)
    vv = jnp.transpose(vv, (0, 1, 3, 2)).reshape(B * n_head, HW, d_k)

    tc, td = params["temperature_c"], params["temperature_d"]
    col_logit = jnp.einsum("bqd,bkd->bqk", qh, kc) / tc
    attn_col = jax.nn.softmax(col_logit, axis=2)
    attn = jnp.einsum("bqk,bkd->bqd", attn_col, vv)
    dif_logit = jnp.einsum("bkd,bqd->bkq", kd, qh) / td
    attn_dif = jax.nn.sigmoid(dif_logit)
    out = jnp.einsum("bkq,bqd->bkd", attn_dif, attn)                  # (B*n, HW, d_k)

    out = out.reshape(B, n_head, H, W, d_k)
    out = jnp.transpose(out, (0, 1, 4, 3, 2)).reshape(B, n_head * d_k, H, W)

    out = out + v
    eps = 1e-5
    scale = params["bn_gamma"] / jnp.sqrt(params["bn_var"] + eps)
    shift = params["bn_beta"] - params["bn_mean"] * scale
    out = out * scale[None, :, None, None] + shift[None, :, None, None]
    return jnp.where(out >= 0, out, 0.1 * out)


# ----------------------------------------------------------------------------
def make_params(key, d_q, d_v, d_o):
    ks = jax.random.split(key, 8)
    return {
        "w_qs_w": jax.random.normal(ks[0], (d_o, d_q), jnp.float32) * 0.1,
        "w_qs_b": jax.random.normal(ks[1], (d_o,), jnp.float32) * 0.1,
        "w_kc_w": jax.random.normal(ks[2], (d_o, d_v, 1, 1), jnp.float32) * 0.1,
        "w_kc_b": jax.random.normal(ks[3], (d_o,), jnp.float32) * 0.1,
        "w_kd_w": jax.random.normal(ks[4], (d_o, d_v, 1, 1), jnp.float32) * 0.1,
        "w_kd_b": jax.random.normal(ks[5], (d_o,), jnp.float32) * 0.1,
        "w_vs_w": jax.random.normal(ks[6], (d_o, d_v, 1, 1), jnp.float32) * 0.1,
        "w_vs_b": jax.random.normal(ks[7], (d_o,), jnp.float32) * 0.1,
        # CollectDiffuseAttention temperatures (init 1.0)
        "temperature_c": jnp.array(1.0, jnp.float32),
        "temperature_d": jnp.array(1.0, jnp.float32),
        # BatchNorm2d default parameters / running stats (eval mode)
        "bn_gamma": jnp.ones((d_o,), jnp.float32),
        "bn_beta": jnp.zeros((d_o,), jnp.float32),
        "bn_mean": jnp.zeros((d_o,), jnp.float32),
        "bn_var": jnp.ones((d_o,), jnp.float32),
    }


if __name__ == "__main__":
    # Second config is non-square with H*W not a multiple of 128 and more heads,
    # exercising the permute(0,1,4,3,2) layout equivalence and masked-store paths.
    configs = [
        # (B, d_q, d_v, H, W, n_head)
        (2, 32, 32, 8, 16, 2),
        (2, 16, 64, 12, 10, 4),
    ]
    for (B, d_q, d_v, H, W, n_head) in configs:
        d_o = d_v
        key = jax.random.PRNGKey(0)
        kq, kv, kp = jax.random.split(key, 3)
        q_in = jax.random.normal(kq, (B, d_q), jnp.float32)
        v_in = jax.random.normal(kv, (B, d_v, H, W), jnp.float32)
        params = make_params(kp, d_q, d_v, d_o)

        fwd = jax.jit(functools.partial(garan_attention_forward, n_head=n_head))
        out = jax.block_until_ready(fwd(q_in, v_in, params))

        ref = reference_forward(q_in, v_in, params, n_head)
        assert out.shape == (B, d_o, H, W)
        assert bool(jnp.all(jnp.isfinite(out)))
        assert bool(jnp.allclose(out, ref, atol=1e-2, rtol=1e-2)), \
            f"mismatch vs reference for config {(B, d_q, d_v, H, W, n_head)}"

    print("KERNEL_OK")
</pallas_src>

<mosaic_0001>
module attributes {stable_mosaic.version = 11 : i64} {
  func.func @_collect_kernel(%arg0: i32, %arg1: i32, %arg2: memref<2xf32, #tpu.memory_space<smem>>, %arg3: memref<1x32x1xf32, #tpu.memory_space<vmem>>, %arg4: memref<1x32x128xbf16, #tpu.memory_space<vmem>>, %arg5: memref<64x32xbf16, #tpu.memory_space<vmem>>, %arg6: memref<64x1xf32, #tpu.memory_space<vmem>>, %arg7: memref<1x32x1xf32, #tpu.memory_space<vmem>>, %arg8: memref<2x1x1xf32, #tpu.memory_space<vmem>>, %arg9: memref<2x1x1xf32, #tpu.memory_space<vmem>>, %arg10: memref<2x16x1xf32, #tpu.memory_space<vmem>>) attributes {dimension_semantics = [#tpu.dimension_semantics<parallel>, #tpu.dimension_semantics<arbitrary>], iteration_bounds = array<i64: 2, 1>, scalar_prefetch = 0 : i64, scratch_operands = 3 : i64, tpu.core_type = #tpu.core_type<tc>, window_params = [{transform_indices = @transform_0, window_bounds = array<i64: 2>}, {transform_indices = @transform_1, window_bounds = array<i64: 1, 32, 1>}, {transform_indices = @transform_2, window_bounds = array<i64: 1, 32, 128>}, {pipeline_mode = #tpu.pipeline_mode<synchronous>, transform_indices = @transform_3, window_bounds = array<i64: 64, 32>}, {pipeline_mode = #tpu.pipeline_mode<synchronous>, transform_indices = @transform_4, window_bounds = array<i64: 64, 1>}, {transform_indices = @transform_5, window_bounds = array<i64: 1, 32, 1>}]} {
    %c0_i32 = arith.constant 0 : i32
    %0 = arith.cmpi eq, %arg1, %c0_i32 : i32
    %1 = arith.extui %0 : i1 to i32
    %c0_i32_0 = arith.constant 0 : i32
    %2 = arith.cmpi ne, %1, %c0_i32_0 : i32
    scf.if %2 {
      %cst_38 = arith.constant 0xFF800000 : f32
      %53 = vector.broadcast %cst_38 : f32 to vector<2x1x1xf32>
      %c0_39 = arith.constant 0 : index
      %c0_40 = arith.constant 0 : index
      %c0_41 = arith.constant 0 : index
      %54 = vector.load %arg8[%c0_39, %c0_40, %c0_41] : memref<2x1x1xf32, #tpu.memory_space<vmem>>, vector<2x1x1xf32>
      tpu.vector_store %arg8[%c0_39, %c0_40, %c0_41], %53 {strides = array<i32>} : memref<2x1x1xf32, #tpu.memory_space<vmem>>, vector<2x1x1xf32>,
      %cst_42 = arith.constant 0.000000e+00 : f32
      %55 = vector.broadcast %cst_42 : f32 to vector<2x1x1xf32>
      %c0_43 = arith.constant 0 : index
      %c0_44 = arith.constant 0 : index
      %c0_45 = arith.constant 0 : index
      %56 = vector.load %arg9[%c0_43, %c0_44, %c0_45] : memref<2x1x1xf32, #tpu.memory_space<vmem>>, vector<2x1x1xf32>
      tpu.vector_store %arg9[%c0_43, %c0_44, %c0_45], %55 {strides = array<i32>} : memref<2x1x1xf32, #tpu.memory_space<vmem>>, vector<2x1x1xf32>,
      %cst_46 = arith.constant 0.000000e+00 : f32
      %57 = vector.broadcast %cst_46 : f32 to vector<2x16x1xf32>
      %c0_47 = arith.constant 0 : index
      %c0_48 = arith.constant 0 : index
      %c0_49 = arith.constant 0 : index
      %58 = vector.load %arg10[%c0_47, %c0_48, %c0_49] : memref<2x16x1xf32, #tpu.memory_space<vmem>>, vector<2x16x1xf32>
      tpu.vector_store %arg10[%c0_47, %c0_48, %c0_49], %57 {strides = array<i32>} : memref<2x16x1xf32, #tpu.memory_space<vmem>>, vector<2x16x1xf32>,
    } else {
    }
    %c0 = arith.constant 0 : index
    %3 = memref.load %arg2[%c0] : memref<2xf32, #tpu.memory_space<smem>>
    %c0_1 = arith.constant 0 : index
    %c0_2 = arith.constant 0 : index
    %4 = vector.load %arg5[%c0_1, %c0_2] : memref<64x32xbf16, #tpu.memory_space<vmem>>, vector<64x32xbf16>
    %c0_3 = arith.constant 0 : index
    %c0_4 = arith.constant 0 : index
    %c0_5 = arith.constant 0 : index
    %5 = vector.load %arg4[%c0_3, %c0_4, %c0_5] : memref<1x32x128xbf16, #tpu.memory_space<vmem>>, vector<1x32x128xbf16>
    %6 = vector.shape_cast %5 : vector<1x32x128xbf16> to vector<32x128xbf16>
    %cst = arith.constant dense<0.000000e+00> : vector<64x128xf32>
    %7 = tpu.matmul %4, %6, %cst {dimension_numbers = #tpu.dot_dimension_numbers<[1], [0], [0], [1], [0, 0, 1, 1], [], []>} : vector<64x32xbf16>, vector<32x128xbf16>, vector<64x128xf32> -> vector<64x128xf32>
    %c0_6 = arith.constant 0 : index
    %c0_7 = arith.constant 0 : index
    %8 = vector.load %arg6[%c0_6, %c0_7] : memref<64x1xf32, #tpu.memory_space<vmem>>, vector<64x1xf32>
    %9 = vector.broadcast %8 : vector<64x1xf32> to vector<64x128xf32>
    %10 = arith.addf %7, %9 : vector<64x128xf32>
    %11 = vector.extract_strided_slice %10 {offsets = [0, 0], sizes = [32, 128], strides = [1, 1]} : vector<64x128xf32> to vector<32x128xf32>
    %12 = vector.shape_cast %11 : vector<32x128xf32> to vector<2x16x128xf32>
    %13 = vector.extract_strided_slice %10 {offsets = [32, 0], sizes = [32, 128], strides = [1, 1]} : vector<64x128xf32> to vector<32x128xf32>
    %14 = vector.shape_cast %13 : vector<32x128xf32> to vector<2x16x128xf32>
    %c0_8 = arith.constant 0 : index
    %c0_9 = arith.constant 0 : index
    %c0_10 = arith.constant 0 : index
    %15 = vector.load %arg3[%c0_8, %c0_9, %c0_10] : memref<1x32x1xf32, #tpu.memory_space<vmem>>, vector<1x32x1xf32>
    %16 = vector.shape_cast %15 : vector<1x32x1xf32> to vector<32x1xf32>
    %17 = vector.shape_cast %16 : vector<32x1xf32> to vector<2x16x1xf32>
    %18 = vector.broadcast %17 : vector<2x16x1xf32> to vector<2x16x128xf32>
    %19 = arith.mulf %12, %18 : vector<2x16x128xf32>
    %cst_11 = arith.constant dense<0.000000e+00> : vector<2x128xf32>
    %20 = vector.multi_reduction <add>, %19, %cst_11 [1] : vector<2x16x128xf32> to vector<2x128xf32>
    %21 = vector.shape_cast %20 : vector<2x128xf32> to vector<2x1x128xf32>
    %22 = vector.broadcast %3 : f32 to vector<2x1x128xf32>
    %23 = arith.mulf %21, %22 : vector<2x1x128xf32>
    %c0_12 = arith.constant 0 : index
    %c0_13 = arith.constant 0 : index
    %c0_14 = arith.constant 0 : index
    %24 = vector.load %arg8[%c0_12, %c0_13, %c0_14] : memref<2x1x1xf32, #tpu.memory_space<vmem>>, vector<2x1x1xf32>
    %cst_15 = arith.constant dense<0xFF800000> : vector<2x1xf32>
    %25 = vector.multi_reduction <maximumf>, %23, %cst_15 [2] : vector<2x1x128xf32> to vector<2x1xf32>
    %26 = vector.shape_cast %25 : vector<2x1xf32> to vector<2x1x1xf32>
    %27 = arith.maximumf %24, %26 : vector<2x1x1xf32>
    %c0_16 = arith.constant 0 : index
    %c0_17 = arith.constant 0 : index
    %c0_18 = arith.constant 0 : index
    %28 = vector.load %arg8[%c0_16, %c0_17, %c0_18] : memref<2x1x1xf32, #tpu.memory_space<vmem>>, vector<2x1x1xf32>
    %29 = arith.subf %28, %27 : vector<2x1x1xf32>
    %30 = math.exp %29 : vector<2x1x1xf32>
    %31 = vector.broadcast %27 : vector<2x1x1xf32> to vector<2x1x128xf32>
    %32 = arith.subf %23, %31 : vector<2x1x128xf32>
    %33 = math.exp %32 : vector<2x1x128xf32>
    %c0_19 = arith.constant 0 : index
    %c0_20 = arith.constant 0 : index
    %c0_21 = arith.constant 0 : index
    %34 = vector.load %arg9[%c0_19, %c0_20, %c0_21] : memref<2x1x1xf32, #tpu.memory_space<vmem>>, vector<2x1x1xf32>
    %35 = arith.mulf %30, %34 : vector<2x1x1xf32>
    %cst_22 = arith.constant dense<0.000000e+00> : vector<2x1xf32>
    %36 = vector.multi_reduction <add>, %33, %cst_22 [2] : vector<2x1x128xf32> to vector<2x1xf32>
    %37 = vector.shape_cast %36 : vector<2x1xf32> to vector<2x1x1xf32>
    %38 = arith.addf %35, %37 : vector<2x1x1xf32>
    %c0_23 = arith.constant 0 : index
    %c0_24 = arith.constant 0 : index
    %c0_25 = arith.constant 0 : index
    %39 = vector.load %arg9[%c0_23, %c0_24, %c0_25] : memref<2x1x1xf32, #tpu.memory_space<vmem>>, vector<2x1x1xf32>
    tpu.vector_store %arg9[%c0_23, %c0_24, %c0_25], %38 {strides = array<i32>} : memref<2x1x1xf32, #tpu.memory_space<vmem>>, vector<2x1x1xf32>,
    %c0_26 = arith.constant 0 : index
    %c0_27 = arith.constant 0 : index
    %c0_28 = arith.constant 0 : index
    %40 = vector.load %arg10[%c0_26, %c0_27, %c0_28] : memref<2x16x1xf32, #tpu.memory_space<vmem>>, vector<2x16x1xf32>
    %41 = vector.broadcast %30 : vector<2x1x1xf32> to vector<2x16x1xf32>
    %42 = arith.mulf %41, %40 : vector<2x16x1xf32>
    %43 = vector.broadcast %33 : vector<2x1x128xf32> to vector<2x16x128xf32>
    %44 = arith.mulf %14, %43 : vector<2x16x128xf32>
    %cst_29 = arith.constant dense<0.000000e+00> : vector<2x16xf32>
    %45 = vector.multi_reduction <add>, %44, %cst_29 [2] : vector<2x16x128xf32> to vector<2x16xf32>
    %46 = vector.shape_cast %45 : vector<2x16xf32> to vector<2x16x1xf32>
    %47 = arith.addf %42, %46 : vector<2x16x1xf32>
    %c0_30 = arith.constant 0 : index
    %c0_31 = arith.constant 0 : index
    %c0_32 = arith.constant 0 : index
    %48 = vector.load %arg10[%c0_30, %c0_31, %c0_32] : memref<2x16x1xf32, #tpu.memory_space<vmem>>, vector<2x16x1xf32>
    tpu.vector_store %arg10[%c0_30, %c0_31, %c0_32], %47 {strides = array<i32>} : memref<2x16x1xf32, #tpu.memory_space<vmem>>, vector<2x16x1xf32>,
    %c0_33 = arith.constant 0 : index
    %c0_34 = arith.constant 0 : index
    %c0_35 = arith.constant 0 : index
    %49 = vector.load %arg8[%c0_33, %c0_34, %c0_35] : memref<2x1x1xf32, #tpu.memory_space<vmem>>, vector<2x1x1xf32>
    tpu.vector_store %arg8[%c0_33, %c0_34, %c0_35], %27 {strides = array<i32>} : memref<2x1x1xf32, #tpu.memory_space<vmem>>, vector<2x1x1xf32>,
    %c0_i32_36 = arith.constant 0 : i32
    %50 = arith.cmpi eq, %arg1, %c0_i32_36 : i32
    %51 = arith.extui %50 : i1 to i32
    %c0_i32_37 = arith.constant 0 : i32
    %52 = arith.cmpi ne, %51, %c0_i32_37 : i32
    scf.if %52 {
      %c0_38 = arith.constant 0 : index
      %c0_39 = arith.constant 0 : index
      %c0_40 = arith.constant 0 : index
      %53 = vector.load %arg10[%c0_38, %c0_39, %c0_40] : memref<2x16x1xf32, #tpu.memory_space<vmem>>, vector<2x16x1xf32>
      %c0_41 = arith.constant 0 : index
      %c0_42 = arith.constant 0 : index
      %c0_43 = arith.constant 0 : index
      %54 = vector.load %arg9[%c0_41, %c0_42, %c0_43] : memref<2x1x1xf32, #tpu.memory_space<vmem>>, vector<2x1x1xf32>
      %55 = vector.broadcast %54 : vector<2x1x1xf32> to vector<2x16x1xf32>
      %56 = arith.divf %53, %55 : vector<2x16x1xf32>
      %57 = vector.shape_cast %56 : vector<2x16x1xf32> to vector<32x1xf32>
      %c0_44 = arith.constant 0 : index
      %c0_45 = arith.constant 0 : index
      %c0_46 = arith.constant 0 : index
      %58 = vector.load %arg7[%c0_44, %c0_45, %c0_46] : memref<1x32x1xf32, #tpu.memory_space<vmem>>, vector<1x32x1xf32>
      %59 = vector.shape_cast %58 : vector<1x32x1xf32> to vector<32x1xf32>
      %60 = vector.shape_cast %57 : vector<32x1xf32> to vector<1x32x1xf32>
      tpu.vector_store %arg7[%c0_44, %c0_45, %c0_46], %60 {strides = array<i32>} : memref<1x32x1xf32, #tpu.memory_space<vmem>>, vector<1x32x1xf32>,
    } else {
    }
    return
  }
  func.func @transform_0(%arg0: i32, %arg1: i32) -> i32 {
    %c0_i32 = arith.constant 0 : i32
    %c0_i32_0 = arith.constant 0 : i32
    return %c0_i32 : i32
  }
  func.func @transform_1(%arg0: i32, %arg1: i32) -> (i32, i32, i32) {
    %c0_i32 = arith.constant 0 : i32
    %c0_i32_0 = arith.constant 0 : i32
    %c0_i32_1 = arith.constant 0 : i32
    return %arg0, %c0_i32, %c0_i32_0 : i32, i32, i32
  }
  func.func @transform_2(%arg0: i32, %arg1: i32) -> (i32, i32, i32) {
    %c0_i32 = arith.constant 0 : i32
    %c0_i32_0 = arith.constant 0 : i32
    return %arg0, %c0_i32, %arg1 : i32, i32, i32
  }
  func.func @transform_3(%arg0: i32, %arg1: i32) -> (i32, i32) {
    %c0_i32 = arith.constant 0 : i32
    %c0_i32_0 = arith.constant 0 : i32
    %c0_i32_1 = arith.constant 0 : i32
    return %c0_i32, %c0_i32_0 : i32, i32
  }
  func.func @transform_4(%arg0: i32, %arg1: i32) -> (i32, i32) {
    %c0_i32 = arith.constant 0 : i32
    %c0_i32_0 = arith.constant 0 : i32
    %c0_i32_1 = arith.constant 0 : i32
    return %c0_i32, %c0_i32_0 : i32, i32
  }
  func.func @transform_5(%arg0: i32, %arg1: i32) -> (i32, i32, i32) {
    %c0_i32 = arith.constant 0 : i32
    %c0_i32_0 = arith.constant 0 : i32
    %c0_i32_1 = arith.constant 0 : i32
    return %arg0, %c0_i32, %c0_i32_0 : i32, i32, i32
  }
}

module attributes {stable_mosaic.version = 11 : i64} {
  func.func @_diffuse_kernel(%arg0: i32, %arg1: i32, %arg2: memref<2xf32, #tpu.memory_space<smem>>, %arg3: memref<1x32x1xf32, #tpu.memory_space<vmem>>, %arg4: memref<1x32x1xf32, #tpu.memory_space<vmem>>, %arg5: memref<1x32x128xbf16, #tpu.memory_space<vmem>>, %arg6: memref<1x32x128xf32, #tpu.memory_space<vmem>>, %arg7: memref<32x32xbf16, #tpu.memory_space<vmem>>, %arg8: memref<32x1xf32, #tpu.memory_space<vmem>>, %arg9: memref<32x1xf32, #tpu.memory_space<vmem>>, %arg10: memref<32x1xf32, #tpu.memory_space<vmem>>, %arg11: memref<1x32x128xf32, #tpu.memory_space<vmem>>) attributes {dimension_semantics = [#tpu.dimension_semantics<parallel>, #tpu.dimension_semantics<parallel>], iteration_bounds = array<i64: 2, 1>, scalar_prefetch = 0 : i64, scratch_operands = 0 : i64, tpu.core_type = #tpu.core_type<tc>, window_params = [{transform_indices = @transform_0, window_bounds = array<i64: 2>}, {transform_indices = @transform_1, window_bounds = array<i64: 1, 32, 1>}, {transform_indices = @transform_2, window_bounds = array<i64: 1, 32, 1>}, {transform_indices = @transform_3, window_bounds = array<i64: 1, 32, 128>}, {transform_indices = @transform_4, window_bounds = array<i64: 1, 32, 128>}, {pipeline_mode = #tpu.pipeline_mode<synchronous>, transform_indices = @transform_5, window_bounds = array<i64: 32, 32>}, {pipeline_mode = #tpu.pipeline_mode<synchronous>, transform_indices = @transform_6, window_bounds = array<i64: 32, 1>}, {pipeline_mode = #tpu.pipeline_mode<synchronous>, transform_indices = @transform_7, window_bounds = array<i64: 32, 1>}, {pipeline_mode = #tpu.pipeline_mode<synchronous>, transform_indices = @transform_8, window_bounds = array<i64: 32, 1>}, {transform_indices = @transform_9, window_bounds = array<i64: 1, 32, 128>}]} {
    %c1 = arith.constant 1 : index
    %0 = memref.load %arg2[%c1] : memref<2xf32, #tpu.memory_space<smem>>
    %c0 = arith.constant 0 : index
    %c0_0 = arith.constant 0 : index
    %1 = vector.load %arg7[%c0, %c0_0] : memref<32x32xbf16, #tpu.memory_space<vmem>>, vector<32x32xbf16>
    %c0_1 = arith.constant 0 : index
    %c0_2 = arith.constant 0 : index
    %c0_3 = arith.constant 0 : index
    %2 = vector.load %arg5[%c0_1, %c0_2, %c0_3] : memref<1x32x128xbf16, #tpu.memory_space<vmem>>, vector<1x32x128xbf16>
    %3 = vector.shape_cast %2 : vector<1x32x128xbf16> to vector<32x128xbf16>
    %cst = arith.constant dense<0.000000e+00> : vector<32x128xf32>
    %4 = tpu.matmul %1, %3, %cst {dimension_numbers = #tpu.dot_dimension_numbers<[1], [0], [0], [1], [0, 0, 1, 1], [], []>} : vector<32x32xbf16>, vector<32x128xbf16>, vector<32x128xf32> -> vector<32x128xf32>
    %c0_4 = arith.constant 0 : index
    %c0_5 = arith.constant 0 : index
    %5 = vector.load %arg8[%c0_4, %c0_5] : memref<32x1xf32, #tpu.memory_space<vmem>>, vector<32x1xf32>
    %6 = vector.broadcast %5 : vector<32x1xf32> to vector<32x128xf32>
    %7 = arith.addf %4, %6 : vector<32x128xf32>
    %c0_6 = arith.constant 0 : index
    %c0_7 = arith.constant 0 : index
    %c0_8 = arith.constant 0 : index
    %8 = vector.load %arg3[%c0_6, %c0_7, %c0_8] : memref<1x32x1xf32, #tpu.memory_space<vmem>>, vector<1x32x1xf32>
    %9 = vector.shape_cast %8 : vector<1x32x1xf32> to vector<32x1xf32>
    %10 = vector.shape_cast %9 : vector<32x1xf32> to vector<2x16x1xf32>
    %11 = vector.shape_cast %7 : vector<32x128xf32> to vector<2x16x128xf32>
    %12 = vector.broadcast %10 : vector<2x16x1xf32> to vector<2x16x128xf32>
    %13 = arith.mulf %11, %12 : vector<2x16x128xf32>
    %cst_9 = arith.constant dense<0.000000e+00> : vector<2x128xf32>
    %14 = vector.multi_reduction <add>, %13, %cst_9 [1] : vector<2x16x128xf32> to vector<2x128xf32>
    %15 = vector.shape_cast %14 : vector<2x128xf32> to vector<2x1x128xf32>
    %16 = vector.broadcast %0 : f32 to vector<2x1x128xf32>
    %17 = arith.mulf %15, %16 : vector<2x1x128xf32>
    %18 = arith.negf %17 : vector<2x1x128xf32>
    %19 = math.exp %18 : vector<2x1x128xf32>
    %cst_10 = arith.constant 1.000000e+00 : f32
    %20 = vector.broadcast %cst_10 : f32 to vector<2x1x128xf32>
    %21 = arith.addf %20, %19 : vector<2x1x128xf32>
    %22 = arith.divf %20, %21 : vector<2x1x128xf32>
    %c0_11 = arith.constant 0 : index
    %c0_12 = arith.constant 0 : index
    %c0_13 = arith.constant 0 : index
    %23 = vector.load %arg4[%c0_11, %c0_12, %c0_13] : memref<1x32x1xf32, #tpu.memory_space<vmem>>, vector<1x32x1xf32>
    %24 = vector.shape_cast %23 : vector<1x32x1xf32> to vector<32x1xf32>
    %25 = vector.shape_cast %24 : vector<32x1xf32> to vector<2x16x1xf32>
    %26 = vector.broadcast %22 : vector<2x1x128xf32> to vector<2x16x128xf32>
    %27 = vector.broadcast %25 : vector<2x16x1xf32> to vector<2x16x128xf32>
    %28 = arith.mulf %26, %27 : vector<2x16x128xf32>
    %29 = vector.shape_cast %28 : vector<2x16x128xf32> to vector<32x128xf32>
    %c0_14 = arith.constant 0 : index
    %c0_15 = arith.constant 0 : index
    %c0_16 = arith.constant 0 : index
    %30 = vector.load %arg6[%c0_14, %c0_15, %c0_16] : memref<1x32x128xf32, #tpu.memory_space<vmem>>, vector<1x32x128xf32>
    %31 = vector.shape_cast %30 : vector<1x32x128xf32> to vector<32x128xf32>
    %32 = arith.addf %29, %31 : vector<32x128xf32>
    %c0_17 = arith.constant 0 : index
    %c0_18 = arith.constant 0 : index
    %33 = vector.load %arg9[%c0_17, %c0_18] : memref<32x1xf32, #tpu.memory_space<vmem>>, vector<32x1xf32>
    %34 = vector.broadcast %33 : vector<32x1xf32> to vector<32x128xf32>
    %35 = arith.mulf %32, %34 : vector<32x128xf32>
    %c0_19 = arith.constant 0 : index
    %c0_20 = arith.constant 0 : index
    %36 = vector.load %arg10[%c0_19, %c0_20] : memref<32x1xf32, #tpu.memory_space<vmem>>, vector<32x1xf32>
    %37 = vector.broadcast %36 : vector<32x1xf32> to vector<32x128xf32>
    %38 = arith.addf %35, %37 : vector<32x128xf32>
    %cst_21 = arith.constant 0.000000e+00 : f32
    %39 = vector.broadcast %cst_21 : f32 to vector<32x128xf32>
    %40 = arith.cmpf oge, %38, %39 : vector<32x128xf32>
    %cst_22 = arith.constant 1.000000e-01 : f32
    %41 = vector.broadcast %cst_22 : f32 to vector<32x128xf32>
    %42 = arith.mulf %41, %38 : vector<32x128xf32>
    %43 = arith.select %40, %38, %42 : vector<32x128xi1>, vector<32x128xf32>
    %c0_23 = arith.constant 0 : index
    %c0_24 = arith.constant 0 : index
    %c0_25 = arith.constant 0 : index
    %44 = vector.load %arg11[%c0_23, %c0_24, %c0_25] : memref<1x32x128xf32, #tpu.memory_space<vmem>>, vector<1x32x128xf32>
    %45 = vector.shape_cast %44 : vector<1x32x128xf32> to vector<32x128xf32>
    %46 = vector.shape_cast %43 : vector<32x128xf32> to vector<1x32x128xf32>
    tpu.vector_store %arg11[%c0_23, %c0_24, %c0_25], %46 {strides = array<i32>} : memref<1x32x128xf32, #tpu.memory_space<vmem>>, vector<1x32x128xf32>,
    return
  }
  func.func @transform_0(%arg0: i32, %arg1: i32) -> i32 {
    %c0_i32 = arith.constant 0 : i32
    %c0_i32_0 = arith.constant 0 : i32
    return %c0_i32 : i32
  }
  func.func @transform_1(%arg0: i32, %arg1: i32) -> (i32, i32, i32) {
    %c0_i32 = arith.constant 0 : i32
    %c0_i32_0 = arith.constant 0 : i32
    %c0_i32_1 = arith.constant 0 : i32
    return %arg0, %c0_i32, %c0_i32_0 : i32, i32, i32
  }
  func.func @transform_2(%arg0: i32, %arg1: i32) -> (i32, i32, i32) {
    %c0_i32 = arith.constant 0 : i32
    %c0_i32_0 = arith.constant 0 : i32
    %c0_i32_1 = arith.constant 0 : i32
    return %arg0, %c0_i32, %c0_i32_0 : i32, i32, i32
  }
  func.func @transform_3(%arg0: i32, %arg1: i32) -> (i32, i32, i32) {
    %c0_i32 = arith.constant 0 : i32
    %c0_i32_0 = arith.constant 0 : i32
    return %arg0, %c0_i32, %arg1 : i32, i32, i32
  }
  func.func @transform_4(%arg0: i32, %arg1: i32) -> (i32, i32, i32) {
    %c0_i32 = arith.constant 0 : i32
    %c0_i32_0 = arith.constant 0 : i32
    return %arg0, %c0_i32, %arg1 : i32, i32, i32
  }
  func.func @transform_5(%arg0: i32, %arg1: i32) -> (i32, i32) {
    %c0_i32 = arith.constant 0 : i32
    %c0_i32_0 = arith.constant 0 : i32
    %c0_i32_1 = arith.constant 0 : i32
    return %c0_i32, %c0_i32_0 : i32, i32
  }
  func.func @transform_6(%arg0: i32, %arg1: i32) -> (i32, i32) {
    %c0_i32 = arith.constant 0 : i32
    %c0_i32_0 = arith.constant 0 : i32
    %c0_i32_1 = arith.constant 0 : i32
    return %c0_i32, %c0_i32_0 : i32, i32
  }
  func.func @transform_7(%arg0: i32, %arg1: i32) -> (i32, i32) {
    %c0_i32 = arith.constant 0 : i32
    %c0_i32_0 = arith.constant 0 : i32
    %c0_i32_1 = arith.constant 0 : i32
    return %c0_i32, %c0_i32_0 : i32, i32
  }
  func.func @transform_8(%arg0: i32, %arg1: i32) -> (i32, i32) {
    %c0_i32 = arith.constant 0 : i32
    %c0_i32_0 = arith.constant 0 : i32
    %c0_i32_1 = arith.constant 0 : i32
    return %c0_i32, %c0_i32_0 : i32, i32
  }
  func.func @transform_9(%arg0: i32, %arg1: i32) -> (i32, i32, i32) {
    %c0_i32 = arith.constant 0 : i32
    %c0_i32_0 = arith.constant 0 : i32
    return %arg0, %c0_i32, %arg1 : i32, i32, i32
  }
}

</mosaic_0001>

<bundles_post_ra>
// kernel: garan_attention_forward.2
= control target key start
LH: loop header
LB: loop body
LE: loop exit
PB: predicated region body
PF: predicated region fallthrough
CT: control target
= control target key end

     0   :  { %10 = vsyncpa [#allocation6], 0  ;;  %s919_s18 = smov 0   ;;  %s921_s19 = smov 0   ;;  %s1049_s0 = inlined_call_operand.vmem [shape: f32[2], index: 0, kind: input, shape index: {}]   ;;  %s1050_s1 = inlined_call_operand.vmem [shape: f32[2,32,1], index: 1, kind: input, shape index: {}]   ;;  %s1051_s2 = inlined_call_operand.vmem [shape: bf16[2,32,128], index: 2, kind: input, shape index: {}]   ;;  %s1052_s3 = inlined_call_operand.vmem [shape: bf16[64,32], index: 3, kind: input, shape index: {}]   ;;  %s1053_s4 = inlined_call_operand.vmem [shape: f32[64,1], index: 4, kind: input, shape index: {}]   ;;  %s1054_s5 = inlined_call_operand.vmem [shape: f32[2,32,1], index: 5, kind: output, shape index: {}]  }
   0x1   :  { %s923_s20 = smov 0  }
   0x2 LB: > { %s732_s21 = sadd.s32 4294967295, %s883_s20   ;;  %s28_s22 = sadd.s32 1, %s879_s19  ;;  %s883_s20 = sphi %s923_s20, %s16_s20   ;;  %s879_s19 = sphi %s921_s19, %s1058_s19   ;;  %s875_s18 = sphi %s919_s18, %s1057_s18  }
   0x3   : > { %p30_p0 = scmp.ge.s32.totalorder %s28_s22, 2  ;;  %p734_p1 = scmp.ge.s32.totalorder %s883_s20, 1 }
   0x4   : > { %p176_p2 = scmp.lt.s32.totalorder %s883_s20, 3  ;;  %p944_p4 = scmp.eq.s32.totalorder %s732_s21, 0 }
   0x5   : > { %s1060_s22 = smov (%p30_p0, %s28_s22), 0  ;;  %s189_s27 = sshll.u32 %s1049_s0, 4  ;;  %s190_s27 = int_to_ptr.vmem [resolvable:$true] %s189_s27 }
   0x6   : > { %p940_p3 = pnand %p734_p1, %p176_p2  ;;  %s842_s28 = scalar_lea.vmem %s190_s27, 16 }
   0x7   : > { %p843_p7 = scmp.ne.s32.totalorder %s190_s27, %s842_s28  ;;  %p850_p11 = scmp.lt.s32.totalorder %s190_s27, %s190_s27 }
   0x8   : > { %p788_p5 = pneg %p940_p3  ;;  %p851_p12 = scmp.lt.s32.totalorder %s842_s28, %s842_s28 }
   0xa   : > { %p789_p6 = pnand %p944_p4, %p788_p5  ;;  %p852_p13 = por %p851_p12, %p850_p11 }
   0xc   : > { %p844_p8 = pneg %p789_p6 }
   0xe   : > { %p845_p9 = pnand %p844_p8, %p843_p7 }
  0x10   : > { %p846_p10 = pneg %p845_p9 }
  0x12   : > { %p853_p0 = pnand %p852_p13, %p846_p10 }
  0x14   : > { %856 = shalt.err (!%p853_p0)
}
  0x15   : > { %s885_s29 = smov [#allocation5]   ;;  %227 = sbr.rel (%p940_p3) target bundleno = 736 (0x2e0), region = 40 }
  0x16   : > { %791 = dma.vmem_to_smem (!%p789_p6), %s190_s27, 16, %s885_s29, [#allocation6]  }
  0x1c   : > { %870 = dma.done.wait (%p944_p4), [#allocation6], 16  }
  0x1d   : > { %872 = vsyncadd (%p944_p4), [#allocation6], 4294967280 }
  0x1e   : > { %233 = sfence }
  0x1f   : > { %p264_p1 = scmp.lt.s32.totalorder %s875_s18, 1  ;;  %v826_v0 = vld [vmem:[%s1052_s3] sm:$0xff]   ;;  %vm390_vm0 = vcmask 261120   ;;  %v312_v1 = vld [vmem:[%s1053_s4 + $0x10] sm:$0xff]  ;;  %v886_v3 = vmov 0   ;;  %v313_v4 = vld [vmem:[%s1053_s4 + $0x18] sm:$0xff] }
  0x20   : > { %772 = vmatprep.mubr.msk.bf16.mxu0 %vm390_vm0, %v826_v0  ;;  %v310_v2 = vld [vmem:[%s1053_s4] sm:$0xff]  ;;  %823 = vset.pattern.permute.xlu1 %v886_v3  ;;  %v311_v5 = vld [vmem:[%s1053_s4 + $0x8] sm:$0xff]  ;;  %v828_v13 = vld [vmem:[%s1052_s3 + $0x10] sm:$0xff]   ;;  %vm287_vm1 = vcmask 0   ;;  %v887_v15 = vmov -inf   ;;  %s297_s8 = sld [smem:[#allocation5]] }
  0x21   : > { %s1062_s18 = smov (!%p264_p1, %s875_s18), 1  ;;  %822 = vset.pattern.permute.xlu0 %v886_v3  ;;  %330 = vperm.xlu1 %823, %v312_v1   ;;  %v827_v10 = vld [vmem:[%s1052_s3 + $0x8] sm:$0xff]   ;;  %v829_v14 = vld [vmem:[%s1052_s3 + $0x18] sm:$0xff]   ;;  %289 = vst.msk [vmem:[#allocation2 + $0x1] sm:$0x1] %vm287_vm1, %v887_v15  ;;  %v888_v53 = vmov 0.0  }
  0x22   : > { %s760_s11 = sshll.u32 %s1062_s18, 4  ;;  %320 = vperm.xlu0 %822, %v310_v2   ;;  %s759_s12 = sshll.u32 %s1062_s18, 5  ;;  %288 = vst.msk [vmem:[#allocation2] sm:$0x1] %vm287_vm1, %v887_v15  ;;  %776 = vmatprep.mubr.msk.bf16.mxu1 %vm390_vm0, %v828_v13  ;;  %291 = vst.msk [vmem:[#allocation3 + $0x1] sm:$0x1] %vm287_vm1, %v888_v53 }
  0x23   : > { %s276_s15 = scalar_lea.vmem %s1051_s2, %s760_s11  ;;  %s268_s26 = scalar_lea.vmem %s1050_s1, %s759_s12  ;;  %290 = vst.msk [vmem:[#allocation3] sm:$0x1] %vm287_vm1, %v888_v53  ;;  %vm292_vm2 = vcmask 7168   ;;  %v315_v63 = vld [vmem:[%s1053_s4 + $0x28] sm:$0xff]  ;;  %v314_v1 = vld [vmem:[%s1053_s4 + $0x20] sm:$0xff] }
  0x24   : > { %v824_v6 = vld [vmem:[%s276_s15] sm:$0xff]   ;;  %v825_v7 = vld [vmem:[%s276_s15 + $0x8] sm:$0xff]   ;;  %v471_v11 = vld [vmem:[%s268_s26 + $0x18] sm:$0xff]  ;;  %295 = vst.msk [vmem:[#allocation4 + $0x10] sm:$0xff] %vm292_vm2, %v888_v53  ;;  %s281_s24 = scalar_lea.vmem %s1054_s5, %s759_s12 }
  0x25   : > { %768 = vmatprep.subr.bf16.mxu0 %v824_v6  ;;  %335 = vperm.xlu1 %823, %v313_v4   ;;  %v469_v8 = vld [vmem:[%s268_s26 + $0x8] sm:$0xff]  ;;  %v468_v9 = vld [vmem:[%s268_s26] sm:$0xff]  ;;  %v470_v12 = vld [vmem:[%s268_s26 + $0x10] sm:$0xff]  ;;  %293 = vst.msk [vmem:[#allocation4] sm:$0xff] %vm292_vm2, %v888_v53 }
  0x26   : > { %769 = vmatpush3.bf16.msra.mxu0 %v824_v6  ;;  %325 = vperm.xlu0 %822, %v311_v5   ;;  %v510_v47 = vstv %s297_s8  ;;  %294 = vst.msk [vmem:[#allocation4 + $0x8] sm:$0xff] %vm292_vm2, %v888_v53  ;;  %296 = vst.msk [vmem:[#allocation4 + $0x18] sm:$0xff] %vm292_vm2, %v888_v53  ;;  %v317_v4 = vld [vmem:[%s1053_s4 + $0x38] sm:$0xff]  ;;  %v316_v5 = vld [vmem:[%s1053_s4 + $0x30] sm:$0xff] }
  0x27   : > { %770 = vmatprep.subr.bf16.mxu0 %v825_v7  ;;  %780 = vmatprep.subr.bf16.mxu1 %v824_v6 }
  0x28   : > { %782 = vmatpush3.bf16.msra.mxu1 %v824_v6  ;;  %v514_v54 = vld [vmem:[#allocation2 + $0x1] sm:$0x1]  ;;  %v532_v6 = vlaneseq }
  0x29   : > { %479 = vperm.xlu1 %823, %v469_v8   ;;  %781 = vmatprep.subr.bf16.mxu1 %v825_v7  ;;  %v513_v55 = vld [vmem:[#allocation2] sm:$0x1] }
  0x2a   : > { %771 = vmatpush3.bf16.msra.mxu0 %v825_v7  ;;  %474 = vperm.xlu0 %822, %v468_v9  }
  0x2c   : > { %783 = vmatpush3.bf16.msra.mxu1 %v825_v7  ;;  %v533_v7 = vshrl.u32 %v532_v6, 7 }
  0x2d   : > { %773 = vmatmul.mubr.msk.bf16.vlgmr.msra.gmra.mrb[0].mxu0 %vm390_vm0, %v827_v10  ;;  %489 = vperm.xlu1 %823, %v471_v11  }
  0x2e   : > { %484 = vperm.xlu0 %822, %v470_v12   ;;  %v534_v8 = vsub.s32 0, %v533_v7 }
  0x2f   : > { %777 = vmatmul.mubr.msk.bf16.vlgmr.msra.gmra.mrb[0].mxu1 %vm390_vm0, %v829_v14 }
  0xa0   : > { %v331_v16 = vpop.permute.xlu1 %330 }
  0xa1   : > { %v321_v17 = vpop.permute.xlu0 %320 }
  0xa4   : > { %v336_v18 = vpop.permute.xlu1 %335 }
  0xa5   : > { %v326_v19 = vpop.permute.xlu0 %325 }
  0xa8   : > { %v480_v20 = vpop.permute.xlu1 %479 }
  0xa9   : > { %v475_v21 = vpop.permute.xlu0 %474 }
  0xac   : > { %v490_v29 = vpop.permute.xlu1 %489 }
  0xad   : > { %v485_v30 = vpop.permute.xlu0 %484 }
 0x100   : > { %v774_v22 = vpop.f32.mrb[0].mxu0 }
 0x101   : > { %v446_v23 = vadd.f32 %v774_v22, %v331_v16  ;;  %v437_v24 = vpop.f32.mrb[1].mxu0 }
 0x102   : > { %v438_v25 = vadd.f32 %v437_v24, %v321_v17  ;;  %v775_v26 = vpop.f32.mrb[2].mxu0  ;;  %v778_v61 = vpop.f32.mrb[0].mxu1 }
 0x103   : > { %v449_v27 = vadd.f32 %v775_v26, %v336_v18  ;;  %v440_v28 = vpop.f32.mrb[3].mxu0  ;;  %v494_v32 = vmul.f32 %v485_v30, %v446_v23  ;;  %v453_v0 = vpop.f32.mrb[1].mxu1 }
 0x104   : > { %v441_v31 = vadd.f32 %v440_v28, %v326_v19  ;;  %v492_v34 = vmul.f32 %v475_v21, %v438_v25  ;;  %v779_v2 = vpop.f32.mrb[2].mxu1 }
 0x105   : > { %v495_v33 = vmul.f32 %v490_v29, %v449_v27  ;;  %v456_v3 = vpop.f32.mrb[3].mxu1 }
 0x106   : > { %v493_v35 = vmul.f32 %v480_v20, %v441_v31 }
 0x107   : > { %v503_v36 = vadd.f32 %v495_v33, %v494_v32 }
 0x108   : > { %v496_v37 = vadd.f32 %v493_v35, %v492_v34  ;;  %v552_v34 = vld [vmem:[#allocation3 + $0x1] sm:$0x1] }
 0x109   : > { %v504_v38 = vrot.slane %v503_v36, 4 }
 0x10a   : > { %v497_v39 = vrot.slane %v496_v37, 4 }
 0x10b   : > { %v505_v40 = vadd.f32 %v504_v38, %v503_v36  ;;  %v551_v36 = vld [vmem:[#allocation3] sm:$0x1] }
 0x10c   : > { %v498_v41 = vadd.f32 %v497_v39, %v496_v37 }
 0x10d   : > { %v506_v42 = vrot.slane %v505_v40, 2 }
 0x10e   : > { %v499_v43 = vrot.slane %v498_v41, 2 }
 0x10f   : > { %v507_v44 = vadd.f32 %v506_v42, %v505_v40 }
 0x110   : > { %v500_v45 = vadd.f32 %v499_v43, %v498_v41  ;;  %v566_v41 = vld [vmem:[#allocation4 + $0x10] sm:$0xff] }
 0x111   : > { %v508_v46 = vrot.slane %v507_v44, 1 }
 0x112   : > { %v501_v48 = vrot.slane %v500_v45, 1 }
 0x113   : > { %v509_v49 = vadd.f32 %v508_v46, %v507_v44 }
 0x114   : > { %v502_v50 = vadd.f32 %v501_v48, %v500_v45  ;;  %v564_v45 = vld [vmem:[#allocation4] sm:$0xff] }
 0x115   : > { %v512_v51 = vmul.f32 %v510_v47, %v509_v49 }
 0x116   : > { %v511_v52 = vmul.f32 %v510_v47, %v502_v50 }
 0x117   : > { %517 = vmax.xlane.f32.xlu1 %v512_v51 }
 0x118   : > { %515 = vmax.xlane.f32.xlu0 %v511_v52 }
 0x1a4   : > { %v518_v56 = vpop.xlane.xlu1 %517 }
 0x1a5   : > { %v520_v57 = vmax.f32 %v514_v54, %v518_v56  ;;  %v516_v58 = vpop.xlane.xlu0 %515  ;;  %v567_v56 = vld [vmem:[#allocation4 + $0x18] sm:$0xff] }
 0x1a6   : > { %v519_v59 = vmax.f32 %v513_v55, %v516_v58 }
 0x1a7   : > { %v522_v60 = vsub.f32 %v514_v54, %v520_v57  ;;  %606 = vst.msk [vmem:[#allocation2 + $0x1] sm:$0x1] %vm287_vm1, %v520_v57  ;;  %538 = vperm.xlu1 %823, %v520_v57  }
 0x1a8   : > { %v521_v62 = vsub.f32 %v513_v55, %v519_v59  ;;  %605 = vst.msk [vmem:[#allocation2] sm:$0x1] %vm287_vm1, %v519_v59  ;;  %529 = vperm.xlu0 %822, %v519_v59  }
 0x1a9   : > { %v525_v31 = vmul.f32 1.442695, %v522_v60 }
 0x1aa   : > { %v523_v32 = vmul.f32 1.442695, %v521_v62 }
 0x1ab   : > { %345 = vperm.xlu1 %823, %v315_v63  }
 0x1ac   : > { %340 = vperm.xlu0 %822, %v314_v1  }
 0x1af   : > { %355 = vperm.xlu1 %823, %v317_v4  }
 0x1b0   : > { %350 = vperm.xlu0 %822, %v316_v5  }
 0x226   : > { %v539_v9 = vpop.permute.xlu1 %538 }
 0x227   : > { %v544_v10 = vrot.slane %v539_v9, %v534_v8  ;;  %v530_v11 = vpop.permute.xlu0 %529 }
 0x228   : > { %v535_v12 = vrot.slane %v530_v11, %v534_v8 }
 0x229   : > { %v546_v13 = vsub.f32 %v512_v51, %v544_v10 }
 0x22a   : > { %v545_v14 = vsub.f32 %v511_v52, %v535_v12  ;;  %v346_v21 = vpop.permute.xlu1 %345  ;;  %v565_v52 = vld [vmem:[#allocation4 + $0x8] sm:$0xff] }
 0x22b   : > { %v549_v15 = vmul.f32 1.442695, %v546_v13  ;;  %v341_v17 = vpop.permute.xlu0 %340  ;;  %v457_v26 = vadd.f32 %v456_v3, %v346_v21 }
 0x22c   : > { %v547_v16 = vmul.f32 1.442695, %v545_v14  ;;  %v454_v23 = vadd.f32 %v453_v0, %v341_v17 }
 0x22d   : > { %830 = vpow2.f32 %v549_v15 }
 0x22e   : > { %832 = vpow2.f32 %v547_v16  ;;  %v356_v27 = vpop.permute.xlu1 %355 }
 0x22f   : > { %v351_v18 = vpop.permute.xlu0 %350  ;;  %v465_v29 = vadd.f32 %v779_v2, %v356_v27  ;;  %834 = vpow2.f32 %v525_v31 }
 0x230   : > { %v462_v22 = vadd.f32 %v778_v61, %v351_v18  ;;  %836 = vpow2.f32 %v523_v32 }
 0x237   : > { %v831_v19 = vpop.eup %830 }
 0x238   : > { %v833_v20 = vpop.eup %832  ;;  %557 = vadd.xlane.f32.xlu1 %v831_v19  ;;  %v586_v24 = vmul.f32 %v831_v19, %v462_v22  ;;  %v587_v30 = vmul.f32 %v831_v19, %v465_v29 }
 0x239   : > { %555 = vadd.xlane.f32.xlu0 %v833_v20  ;;  %v584_v25 = vmul.f32 %v833_v20, %v454_v23  ;;  %v585_v28 = vmul.f32 %v833_v20, %v457_v26  ;;  %v835_v33 = vpop.eup %834 }
 0x23a   : > { %v837_v35 = vpop.eup %836  ;;  %v554_v37 = vmul.f32 %v835_v33, %v552_v34  ;;  %v577_v38 = vrot.slane %v835_v33, %v534_v8 }
 0x23b   : > { %v553_v40 = vmul.f32 %v837_v35, %v551_v36  ;;  %v573_v42 = vrot.slane %v837_v35, %v534_v8 }
 0x23c   : > { %592 = vadd.xlane.f32.xlu1 %v586_v24  ;;  %v582_v47 = vmul.f32 %v577_v38, %v566_v41  ;;  %v583_v60 = vmul.f32 %v577_v38, %v567_v56 }
 0x23d   : > { %588 = vadd.xlane.f32.xlu0 %v584_v25  ;;  %v580_v49 = vmul.f32 %v573_v42, %v564_v45  ;;  %v581_v54 = vmul.f32 %v573_v42, %v565_v52 }
 0x241   : > { %590 = vadd.xlane.f32.xlu0 %v585_v28 }
 0x245   : > { %594 = vadd.xlane.f32.xlu0 %v587_v30 }
 0x2c5   : > { %v558_v39 = vpop.xlane.xlu1 %557 }
 0x2c6   : > { %v560_v43 = vadd.f32 %v558_v39, %v554_v37  ;;  %v556_v44 = vpop.xlane.xlu0 %555 }
 0x2c7   : > { %v559_v46 = vadd.f32 %v556_v44, %v553_v40 }
 0x2c8   : > { %563 = vst.msk [vmem:[#allocation3 + $0x1] sm:$0x1] %vm287_vm1, %v560_v43 }
 0x2c9   : > { %562 = vst.msk [vmem:[#allocation3] sm:$0x1] %vm287_vm1, %v559_v46  ;;  %v593_v48 = vpop.xlane.xlu1 %592 }
 0x2ca   : > { %v598_v50 = vadd.f32 %v593_v48, %v582_v47  ;;  %v589_v51 = vpop.xlane.xlu0 %588 }
 0x2cb   : > { %v596_v53 = vadd.f32 %v589_v51, %v580_v49 }
 0x2cc   : > { %603 = vst.msk [vmem:[#allocation4 + $0x10] sm:$0xff] %vm292_vm2, %v598_v50 }
 0x2cd   : > { %601 = vst.msk [vmem:[#allocation4] sm:$0xff] %vm292_vm2, %v596_v53 }
 0x2ce   : > { %v591_v55 = vpop.xlane.xlu0 %590 }
 0x2cf   : > { %v756_v57 = vld [vmem:[#allocation3 + $0x1] ss:$0 sm:$0xff]  ;;  %v597_v58 = vadd.f32 %v591_v55, %v581_v54 }
 0x2d0   : > { %838 = vrcp.f32 %v756_v57  ;;  %v755_v59 = vld [vmem:[#allocation3] ss:$0 sm:$0xff] }
 0x2d1   : > { %840 = vrcp.f32 %v755_v59  ;;  %602 = vst.msk [vmem:[#allocation4 + $0x8] sm:$0xff] %vm292_vm2, %v597_v58 }
 0x2d2   : > { %v595_v61 = vpop.xlane.xlu0 %594 }
 0x2d3   : > { %v599_v62 = vadd.f32 %v595_v61, %v583_v60  ;;  %v612_v0 = vld [vmem:[#allocation4 + $0x10] sm:$0xff] }
 0x2d4   : > { %v610_v3 = vld [vmem:[#allocation4] sm:$0xff] }
 0x2d5   : > { %604 = vst.msk [vmem:[#allocation4 + $0x18] sm:$0xff] %vm292_vm2, %v599_v62 }
 0x2d8   : > { %v611_v4 = vld [vmem:[#allocation4 + $0x8] sm:$0xff] }
 0x2da   : > { %v839_v63 = vpop.eup %838 }
 0x2db   : > { %v841_v1 = vpop.eup %840  ;;  %v632_v2 = vmul.f32 %v839_v63, %v612_v0 }
 0x2dc   : > { %v629_v5 = vmul.f32 %v841_v1, %v610_v3  ;;  %v630_v6 = vmul.f32 %v841_v1, %v611_v4  ;;  %v613_v7 = vld [vmem:[#allocation4 + $0x18] sm:$0xff] }
 0x2dd   : > { %636 = vst.msk [vmem:[%s281_s24 + $0x10] sm:$0xff] %vm292_vm2, %v632_v2  ;;  %v633_v8 = vmul.f32 %v839_v63, %v613_v7 }
 0x2de   : > { %634 = vst.msk [vmem:[%s281_s24] sm:$0xff] %vm292_vm2, %v629_v5  ;;  %635 = vst.msk [vmem:[%s281_s24 + $0x8] sm:$0xff] %vm292_vm2, %v630_v6 }
 0x2df   : > { %637 = vst.msk [vmem:[%s281_s24 + $0x18] sm:$0xff] %vm292_vm2, %v633_v8 }
 0x2e0 PF: > { %s16_s20 = sadd.s32 1, %s883_s20   ;;  %s1057_s18 = smov %s879_s19 }
 0x2e1   : > { %p13_p2 = scmp.ge.s32.totalorder %s16_s20, 4   ;;  %s1058_s19 = smov %s1060_s22 }
 0x2e3   :  { %15 = sbr.rel (!%p13_p2) target bundleno = 2 (0x2), region = 86 }
 0x2ea   :  { %659 = vsyncpa [#allocation6], 1 }
 0x2eb   :  { %661 = vsyncpa [#allocation6 + $0x1], 1 }

// kernel: garan_attention_forward.3
= control target key start
LH: loop header
LB: loop body
LE: loop exit
PB: predicated region body
PF: predicated region fallthrough
CT: control target
= control target key end

     0   :  { %14 = vsyncpa [#allocation3], 0  ;;  %s1054_s30 = smov 0   ;;  %s1056_s10 = smov 0   ;;  %s1172_s0 = inlined_call_operand.vmem [shape: f32[2], index: 0, kind: input, shape index: {}]   ;;  %s1173_s1 = inlined_call_operand.vmem [shape: f32[2,32,1], index: 1, kind: input, shape index: {}]   ;;  %s1174_s2 = inlined_call_operand.vmem [shape: f32[2,32,1], index: 2, kind: input, shape index: {}]   ;;  %s1175_s3 = inlined_call_operand.vmem [shape: bf16[2,32,128], index: 3, kind: input, shape index: {}]   ;;  %s1176_s4 = inlined_call_operand.vmem [shape: f32[2,32,128], index: 4, kind: input, shape index: {}]   ;;  %s1177_s5 = inlined_call_operand.vmem [shape: bf16[32,32], index: 5, kind: input, shape index: {}]   ;;  %s1178_s6 = inlined_call_operand.vmem [shape: f32[32,1], index: 6, kind: input, shape index: {}]   ;;  %s1179_s7 = inlined_call_operand.vmem [shape: f32[32,1], index: 7, kind: input, shape index: {}]   ;;  %s1180_s8 = inlined_call_operand.vmem [shape: f32[32,1], index: 8, kind: input, shape index: {}]   ;;  %s1181_s9 = inlined_call_operand.vmem [shape: f32[2,32,128], index: 9, kind: output, shape index: {}]  }
   0x1   :  { %s1058_s11 = smov 0  }
   0x2 LB: > { %s864_s12 = sadd.s32 4294967295, %s1000_s11   ;;  %s32_s13 = sadd.s32 1, %s996_s10  ;;  %s1000_s11 = sphi %s1058_s11, %s20_s11   ;;  %s996_s10 = sphi %s1056_s10, %s1185_s10   ;;  %s992_s30 = sphi %s1054_s30, %s1184_s30  }
   0x3   : > { %p34_p0 = scmp.ge.s32.totalorder %s32_s13, 2  ;;  %p866_p1 = scmp.ge.s32.totalorder %s1000_s11, 1 }
   0x4   : > { %p278_p2 = scmp.lt.s32.totalorder %s1000_s11, 3  ;;  %p1079_p4 = scmp.eq.s32.totalorder %s864_s12, 0 }
   0x5   : > { %s1187_s13 = smov (%p34_p0, %s32_s13), 0  ;;  %s291_s18 = sshll.u32 %s1172_s0, 4  ;;  %s292_s18 = int_to_ptr.vmem [resolvable:$true] %s291_s18 }
   0x6   : > { %p1075_p3 = pnand %p866_p1, %p278_p2  ;;  %s959_s19 = scalar_lea.vmem %s292_s18, 16 }
   0x7   : > { %p960_p7 = scmp.ne.s32.totalorder %s292_s18, %s959_s19  ;;  %p967_p11 = scmp.lt.s32.totalorder %s292_s18, %s292_s18 }
   0x8   : > { %p913_p5 = pneg %p1075_p3  ;;  %p968_p12 = scmp.lt.s32.totalorder %s959_s19, %s959_s19 }
   0xa   : > { %p914_p6 = pnand %p1079_p4, %p913_p5  ;;  %p969_p13 = por %p968_p12, %p967_p11 }
   0xc   : > { %p961_p8 = pneg %p914_p6 }
   0xe   : > { %p962_p9 = pnand %p961_p8, %p960_p7 }
  0x10   : > { %p963_p10 = pneg %p962_p9 }
  0x12   : > { %p970_p0 = pnand %p969_p13, %p963_p10 }
  0x14   : > { %973 = shalt.err (!%p970_p0)
}
  0x15   : > { %s1002_s20 = smov [#allocation2]   ;;  %354 = sbr.rel (%p1075_p3) target bundleno = 318 (0x13e), region = 56 }
  0x16   : > { %916 = dma.vmem_to_smem (!%p914_p6), %s292_s18, 16, %s1002_s20, [#allocation3]  }
  0x1c   : > { %987 = dma.done.wait (%p1079_p4), [#allocation3], 16  }
  0x1d   : > { %989 = vsyncadd (%p1079_p4), [#allocation3], 4294967280 }
  0x1e   : > { %360 = sfence }
  0x1f   : > { %p415_p1 = scmp.lt.s32.totalorder %s992_s30, 1  ;;  %v949_v0 = vld [vmem:[%s1177_s5] sm:$0xff]   ;;  %vm505_vm0 = vcmask 261120   ;;  %v461_v1 = vld [vmem:[%s1178_s6 + $0x10] sm:$0xff]  ;;  %v1003_v3 = vmov 0   ;;  %v462_v4 = vld [vmem:[%s1178_s6 + $0x18] sm:$0xff] }
  0x20   : > { %905 = vmatprep.mubr.msk.bf16.mxu0 %vm505_vm0, %v949_v0  ;;  %v459_v2 = vld [vmem:[%s1178_s6] sm:$0xff]  ;;  %946 = vset.pattern.permute.xlu1 %v1003_v3  ;;  %v460_v5 = vld [vmem:[%s1178_s6 + $0x8] sm:$0xff]  ;;  %v657_v19 = vld [vmem:[%s1179_s7 + $0x18] sm:$0xff] }
  0x21   : > { %s1189_s30 = smov (!%p415_p1, %s992_s30), 1  ;;  %945 = vset.pattern.permute.xlu0 %v1003_v3  ;;  %475 = vperm.xlu1 %946, %v461_v1   ;;  %v950_v10 = vld [vmem:[%s1177_s5 + $0x8] sm:$0xff]   ;;  %v654_v18 = vld [vmem:[%s1179_s7] sm:$0xff]  ;;  %v656_v20 = vld [vmem:[%s1179_s7 + $0x10] sm:$0xff] }
  0x22   : > { %s894_s27 = sshll.u32 %s1189_s30, 4  ;;  %465 = vperm.xlu0 %945, %v459_v2   ;;  %s1108_s28 = sshll.u32 %s1189_s30, 5  ;;  %v655_v17 = vld [vmem:[%s1179_s7 + $0x8] sm:$0xff]  ;;  %v682_v22 = vld [vmem:[%s1180_s8] sm:$0xff]  ;;  %v685_v23 = vld [vmem:[%s1180_s8 + $0x18] sm:$0xff] }
  0x23   : > { %s432_s14 = scalar_lea.vmem %s1175_s3, %s894_s27  ;;  %s419_s30 = scalar_lea.vmem %s1173_s1, %s1108_s28  ;;  %v683_v21 = vld [vmem:[%s1180_s8 + $0x8] sm:$0xff]  ;;  %v684_v24 = vld [vmem:[%s1180_s8 + $0x10] sm:$0xff] }
  0x24   : > { %v947_v6 = vld [vmem:[%s432_s14] sm:$0xff]   ;;  %v948_v7 = vld [vmem:[%s432_s14 + $0x8] sm:$0xff]   ;;  %v564_v11 = vld [vmem:[%s419_s30 + $0x18] sm:$0xff]  ;;  %s424_s25 = scalar_lea.vmem %s1174_s2, %s1108_s28  ;;  %s440_s29 = scalar_lea.vmem %s1176_s4, %s1108_s28 }
  0x25   : > { %901 = vmatprep.subr.bf16.mxu0 %v947_v6  ;;  %480 = vperm.xlu1 %946, %v462_v4   ;;  %v562_v8 = vld [vmem:[%s419_s30 + $0x8] sm:$0xff]  ;;  %v561_v9 = vld [vmem:[%s419_s30] sm:$0xff]  ;;  %v563_v12 = vld [vmem:[%s419_s30 + $0x10] sm:$0xff]  ;;  %s448_s15 = scalar_lea.vmem %s1181_s9, %s1108_s28 }
  0x26   : > { %902 = vmatpush3.bf16.msra.mxu0 %v947_v6  ;;  %470 = vperm.xlu0 %945, %v460_v5   ;;  %v619_v13 = vld [vmem:[%s424_s25 + $0x8] sm:$0xff]  ;;  %v618_v14 = vld [vmem:[%s424_s25] sm:$0xff]  ;;  %v621_v15 = vld [vmem:[%s424_s25 + $0x18] sm:$0xff] }
  0x27   : > { %903 = vmatprep.subr.bf16.mxu0 %v948_v7  ;;  %v620_v16 = vld [vmem:[%s424_s25 + $0x10] sm:$0xff]  ;;  %s881_s25 = sld [smem:[#allocation2 + $0x1]] }
  0x29   : > { %572 = vperm.xlu1 %946, %v562_v8  }
  0x2a   : > { %904 = vmatpush3.bf16.msra.mxu0 %v948_v7  ;;  %567 = vperm.xlu0 %945, %v561_v9  }
  0x2d   : > { %906 = vmatmul.mubr.msk.bf16.vlgmr.msra.gmra.mrb[0].mxu0 %vm505_vm0, %v950_v10  ;;  %582 = vperm.xlu1 %946, %v564_v11   ;;  %v603_v56 = vstv %s881_s25 }
  0x2e   : > { %577 = vperm.xlu0 %945, %v563_v12  }
  0x31   : > { %629 = vperm.xlu1 %946, %v619_v13   ;;  %v648_v13 = vld [vmem:[%s440_s29 + $0x10] sm:$0xff] }
  0x32   : > { %624 = vperm.xlu0 %945, %v618_v14   ;;  %v649_v14 = vld [vmem:[%s440_s29 + $0x18] sm:$0xff] }
  0x35   : > { %639 = vperm.xlu1 %946, %v621_v15  }
  0x36   : > { %634 = vperm.xlu0 %945, %v620_v16  }
  0x39   : > { %665 = vperm.xlu1 %946, %v655_v17  }
  0x3a   : > { %660 = vperm.xlu0 %945, %v654_v18   ;;  %v646_v18 = vld [vmem:[%s440_s29] sm:$0xff] }
  0x3d   : > { %675 = vperm.xlu1 %946, %v657_v19   ;;  %v647_v19 = vld [vmem:[%s440_s29 + $0x8] sm:$0xff] }
  0x3e   : > { %670 = vperm.xlu0 %945, %v656_v20  }
  0x41   : > { %693 = vperm.xlu1 %946, %v683_v21  }
  0x42   : > { %688 = vperm.xlu0 %945, %v682_v22  }
  0x45   : > { %703 = vperm.xlu1 %946, %v685_v23  }
  0x46   : > { %698 = vperm.xlu0 %945, %v684_v24  }
  0xa0   : > { %v476_v25 = vpop.permute.xlu1 %475 }
  0xa1   : > { %v466_v26 = vpop.permute.xlu0 %465 }
  0xa4   : > { %v481_v27 = vpop.permute.xlu1 %480 }
  0xa5   : > { %v471_v28 = vpop.permute.xlu0 %470 }
  0xa8   : > { %v573_v29 = vpop.permute.xlu1 %572 }
  0xa9   : > { %v568_v30 = vpop.permute.xlu0 %567 }
  0xac   : > { %v583_v38 = vpop.permute.xlu1 %582 }
  0xad   : > { %v578_v39 = vpop.permute.xlu0 %577 }
  0xb0   : > { %v630_v63 = vpop.permute.xlu1 %629 }
  0xb1   : > { %v625_v0 = vpop.permute.xlu0 %624 }
  0xb4   : > { %v640_v2 = vpop.permute.xlu1 %639 }
  0xb5   : > { %v635_v3 = vpop.permute.xlu0 %634 }
  0xb8   : > { %v666_v6 = vpop.permute.xlu1 %665 }
  0xb9   : > { %v661_v7 = vpop.permute.xlu0 %660 }
  0xbc   : > { %v676_v10 = vpop.permute.xlu1 %675 }
  0xbd   : > { %v671_v11 = vpop.permute.xlu0 %670 }
  0xc0   : > { %v694_v15 = vpop.permute.xlu1 %693 }
  0xc1   : > { %v689_v16 = vpop.permute.xlu0 %688 }
 0x100   : > { %v907_v31 = vpop.f32.mrb[0].mxu0 }
 0x101   : > { %v555_v32 = vadd.f32 %v907_v31, %v476_v25  ;;  %v546_v33 = vpop.f32.mrb[1].mxu0  ;;  %v699_v31 = vpop.permute.xlu0 %698 }
 0x102   : > { %v547_v34 = vadd.f32 %v546_v33, %v466_v26  ;;  %v908_v35 = vpop.f32.mrb[2].mxu0 }
 0x103   : > { %v558_v36 = vadd.f32 %v908_v35, %v481_v27  ;;  %v549_v37 = vpop.f32.mrb[3].mxu0  ;;  %v587_v41 = vmul.f32 %v578_v39, %v555_v32 }
 0x104   : > { %v550_v40 = vadd.f32 %v549_v37, %v471_v28  ;;  %v585_v43 = vmul.f32 %v568_v30, %v547_v34  ;;  %v704_v30 = vpop.permute.xlu1 %703 }
 0x105   : > { %v588_v42 = vmul.f32 %v583_v38, %v558_v36 }
 0x106   : > { %v586_v44 = vmul.f32 %v573_v29, %v550_v40 }
 0x107   : > { %v596_v45 = vadd.f32 %v588_v42, %v587_v41 }
 0x108   : > { %v589_v46 = vadd.f32 %v586_v44, %v585_v43 }
 0x109   : > { %v597_v47 = vrot.slane %v596_v45, 4 }
 0x10a   : > { %v590_v48 = vrot.slane %v589_v46, 4 }
 0x10b   : > { %v598_v49 = vadd.f32 %v597_v47, %v596_v45 }
 0x10c   : > { %v591_v50 = vadd.f32 %v590_v48, %v589_v46 }
 0x10d   : > { %v599_v51 = vrot.slane %v598_v49, 2 }
 0x10e   : > { %v592_v52 = vrot.slane %v591_v50, 2 }
 0x10f   : > { %v600_v53 = vadd.f32 %v599_v51, %v598_v49 }
 0x110   : > { %v593_v54 = vadd.f32 %v592_v52, %v591_v50 }
 0x111   : > { %v601_v55 = vrot.slane %v600_v53, 1 }
 0x112   : > { %v594_v57 = vrot.slane %v593_v54, 1 }
 0x113   : > { %v602_v58 = vadd.f32 %v601_v55, %v600_v53 }
 0x114   : > { %v595_v59 = vadd.f32 %v594_v57, %v593_v54 }
 0x115   : > { %v605_v60 = vmul.f32 %v603_v56, %v602_v58 }
 0x116   : > { %v604_v61 = vmul.f32 %v603_v56, %v595_v59 }
 0x117   : > { %v889_v62 = vmul.f32 -1.442695, %v605_v60 }
 0x118   : > { %v888_v1 = vmul.f32 -1.442695, %v604_v61 }
 0x119   : > { %951 = vpow2.f32 %v889_v62 }
 0x11a   : > { %953 = vpow2.f32 %v888_v1 }
 0x123   : > { %v952_v4 = vpop.eup %951 }
 0x124   : > { %v954_v5 = vpop.eup %953  ;;  %v613_v8 = vadd.f32 1.0, %v952_v4 }
 0x125   : > { %v612_v9 = vadd.f32 1.0, %v954_v5 }
 0x126   : > { %955 = vrcp.f32 %v613_v8 }
 0x127   : > { %957 = vrcp.f32 %v612_v9 }
 0x130   : > { %v956_v12 = vpop.eup %955 }
 0x131   : > { %v958_v17 = vpop.eup %957  ;;  %v644_v20 = vmul.f32 %v956_v12, %v635_v3  ;;  %v645_v21 = vmul.f32 %v956_v12, %v640_v2 }
 0x132   : > { %v642_v22 = vmul.f32 %v958_v17, %v625_v0  ;;  %v643_v23 = vmul.f32 %v958_v17, %v630_v63 }
 0x133   : > { %v652_v24 = vadd.f32 %v648_v13, %v644_v20  ;;  %v653_v25 = vadd.f32 %v649_v14, %v645_v21 }
 0x134   : > { %v650_v26 = vadd.f32 %v646_v18, %v642_v22  ;;  %v651_v27 = vadd.f32 %v647_v19, %v643_v23 }
 0x135   : > { %v680_v28 = vmul.f32 %v671_v11, %v652_v24  ;;  %v681_v29 = vmul.f32 %v676_v10, %v653_v25 }
 0x136   : > { %v678_v32 = vmul.f32 %v661_v7, %v650_v26  ;;  %v679_v33 = vmul.f32 %v666_v6, %v651_v27 }
 0x137   : > { %v708_v34 = vadd.f32 %v699_v31, %v680_v28  ;;  %v709_v35 = vadd.f32 %v704_v30, %v681_v29 }
 0x138   : > { %v706_v36 = vadd.f32 %v689_v16, %v678_v32  ;;  %v707_v37 = vadd.f32 %v694_v15, %v679_v33 }
 0x139   : > { %vm712_vm1 = vcmp.ge.f32.partialorder %v708_v34, 0.0  ;;  %vm713_vm2 = vcmp.ge.f32.partialorder %v709_v35, 0.0  ;;  %v716_v38 = vmul.f32 0.1, %v708_v34  ;;  %v717_v39 = vmul.f32 0.1, %v709_v35 }
 0x13a   : > { %vm710_vm3 = vcmp.ge.f32.partialorder %v706_v36, 0.0  ;;  %vm711_vm4 = vcmp.ge.f32.partialorder %v707_v37, 0.0  ;;  %v714_v40 = vmul.f32 0.1, %v706_v36  ;;  %v715_v41 = vmul.f32 0.1, %v707_v37 }
 0x13b   : > { %v720_v42 = vsel %vm712_vm1, %v708_v34, %v716_v38  ;;  %v721_v43 = vsel %vm713_vm2, %v709_v35, %v717_v39 }
 0x13c   : > { %724 = vst [vmem:[%s448_s15 + $0x10] sm:$0xff] %v720_v42  ;;  %725 = vst [vmem:[%s448_s15 + $0x18] sm:$0xff] %v721_v43  ;;  %v718_v44 = vsel %vm710_vm3, %v706_v36, %v714_v40  ;;  %v719_v45 = vsel %vm711_vm4, %v707_v37, %v715_v41 }
 0x13d   : > { %722 = vst [vmem:[%s448_s15] sm:$0xff] %v718_v44  ;;  %723 = vst [vmem:[%s448_s15 + $0x8] sm:$0xff] %v719_v45 }
 0x13e PF: > { %s20_s11 = sadd.s32 1, %s1000_s11   ;;  %s1184_s30 = smov %s996_s10 }
 0x13f   : > { %p17_p2 = scmp.ge.s32.totalorder %s20_s11, 4   ;;  %s1185_s10 = smov %s1187_s13 }
 0x141   :  { %19 = sbr.rel (!%p17_p2) target bundleno = 2 (0x2), region = 100 }
 0x148   :  { %753 = vsyncpa [#allocation3], 1 }
 0x149   :  { %755 = vsyncpa [#allocation3 + $0x1], 1 }

</bundles_post_ra>
